<compile_context>
chip_gen: v5e
topology: v5e:2x2
jax: 0.10.0
libtpu: 0.0.40
codegen_flags: <defaults>
</compile_context>

<pallas_src>
import functools

import jax
import jax.numpy as jnp
from jax.experimental import pallas as pl
from jax.experimental.pallas import tpu as pltpu


def _soft_ce_kernel(x_ref, t_ref, o_ref, *, total_rows, tile_rows, num_tiles):
    """One (TM, C) row tile -> lane-dense (1, 1, C) partial loss sum."""
    x = x_ref[...].astype(jnp.float32)          # (TM, C)
    t = t_ref[...].astype(jnp.float32)          # (TM, C)

    # Numerically stable log_softmax along the class (lane) axis.
    m = jnp.max(x, axis=-1, keepdims=True)      # (TM, 1)
    s = x - m
    lse = jnp.log(jnp.sum(jnp.exp(s), axis=-1, keepdims=True))
    # -t * log_softmax(x) == t * (lse - s)
    contrib = t * (lse - s)                     # (TM, C)

    def _store(values):
        # Reduce only over the sublane (row) axis; keep the class axis
        # lane-dense so the per-tile store is a full-width unmasked vst.
        o_ref[...] = jnp.sum(values, axis=0, keepdims=True).reshape(o_ref.shape)

    if total_rows % tile_rows == 0:
        # Statically aligned: no tail masking code at all.
        _store(contrib)
    else:
        i = pl.program_id(0)
        is_last = i == num_tiles - 1

        @pl.when(jnp.logical_not(is_last))
        def _():
            _store(contrib)

        @pl.when(is_last)
        def _():
            # (TM, 1) row-validity mask; select blocks NaN/Inf from padded rows.
            row = jax.lax.broadcasted_iota(jnp.int32, (tile_rows, 1), 0)
            valid = (i * tile_rows + row) < total_rows
            _store(jnp.where(valid, contrib, 0.0))


def _physical_vmem_bytes():
    """Per-core physical VMEM; conservative 64 MiB (v7x) fallback."""
    try:
        return int(pltpu.get_tpu_info().vmem_capacity_bytes)
    except Exception:
        return 64 * 1024 * 1024


def _sublane_pack(itemsize_x, itemsize_t):
    """Native sublane packing: 8 for f32, 16 for bf16/fp16, 32 for 8-bit."""
    min_itemsize = max(1, min(itemsize_x, itemsize_t))
    return max(8, 32 // min_itemsize)


def _choose_tile_rows(n_rows, n_classes, itemsize_x, itemsize_t, pack, vmem_cap):
    """Largest sublane-aligned row tile whose full working set fits the budget."""
    # Double-buffered input tiles + ~5 f32-sized intermediates per row
    # (x_f32, t_f32, s/logp, exp, contrib) actually live in VMEM/vregs.
    per_row_inputs = 2 * n_classes * (itemsize_x + itemsize_t)
    per_row_f32 = 5 * n_classes * 4
    per_row = max(1, per_row_inputs + per_row_f32)

    budget = vmem_cap // 2
    cap = max(pack, budget // per_row)
    cap = min(cap, 1024)

    # Guarantee >= 2 row tiles when N allows it, so the "parallel" axis can
    # shard across both v7x TensorCores (negligible cost on v5e/v6e).
    if n_rows >= 2 * pack:
        cap = min(cap, max(pack, ((n_rows + 1) // 2 // pack) * pack))

    if n_rows <= cap:
        return n_rows            # single full-extent tile (any n_rows is legal)
    return max(pack, (cap // pack) * pack)


def soft_target_cross_entropy(x, target, *, tile_rows=None,
                              vmem_limit_bytes=None):
    """x, target: (N, C) arrays. Returns scalar f32 loss (mean over N).

    The kernel is strictly HBM-bandwidth-bound: prefer passing bf16/fp16
    inputs (math is f32 in-kernel) to roughly halve wall-clock time.
    """
    N, C = x.shape
    assert target.shape == (N, C)

    vmem_cap = _physical_vmem_bytes()
    isx = jnp.dtype(x.dtype).itemsize
    ist = jnp.dtype(target.dtype).itemsize
    pack = _sublane_pack(isx, ist)

    if tile_rows is None:
        tile_rows = _choose_tile_rows(N, C, isx, ist, pack, vmem_cap)
    if vmem_limit_bytes is None:
        vmem_limit_bytes = max(32 * 1024 * 1024, int(vmem_cap * 0.8))

    num_tiles = pl.cdiv(N, tile_rows)
    kernel = functools.partial(_soft_ce_kernel, total_rows=N,
                               tile_rows=tile_rows, num_tiles=num_tiles)

    partials = pl.pallas_call(
        kernel,
        out_shape=jax.ShapeDtypeStruct((num_tiles, 1, C), jnp.float32),
        grid_spec=pltpu.PrefetchScalarGridSpec(
            num_scalar_prefetch=0,
            grid=(num_tiles,),
            in_specs=[
                pl.BlockSpec((tile_rows, C), lambda i: (i, 0)),
                pl.BlockSpec((tile_rows, C), lambda i: (i, 0)),
            ],
            # Distinct block per grid step -> no cross-step dependency.
            out_specs=pl.BlockSpec((1, 1, C), lambda i: (i, 0, 0)),
        ),
        compiler_params=pltpu.CompilerParams(
            dimension_semantics=("parallel",),
            vmem_limit_bytes=vmem_limit_bytes,
        ),
    )(x, target)

    # Final reduction over tiles and classes + mean over the TRUE row count.
    return jnp.sum(partials) / jnp.float32(N)


if __name__ == "__main__":
    def reference(x, t):
        xf = x.astype(jnp.float32)
        tf = t.astype(jnp.float32)
        return jnp.mean(jnp.sum(-tf * jax.nn.log_softmax(xf, axis=-1), axis=-1))

    key = jax.random.PRNGKey(0)
    kx, kt = jax.random.split(key)

    # Test 1: small lane-aligned f32 case (auto-split into >= 2 row tiles).
    N, C = 16, 128
    x = jax.random.normal(kx, (N, C), dtype=jnp.float32)
    target = jax.nn.softmax(jax.random.normal(kt, (N, C), dtype=jnp.float32),
                            axis=-1)
    loss = jax.block_until_ready(soft_target_cross_entropy(x, target))
    ref = reference(x, target)
    assert jnp.allclose(loss, ref, rtol=1e-5, atol=1e-5), (loss, ref)

    # Test 2: N not divisible by the tile (exercises last-tile-only masking
    # and the multi-tile parallel grid with per-tile partial sums).
    N2, C2 = 20, 256
    x2 = jax.random.normal(jax.random.PRNGKey(1), (N2, C2), dtype=jnp.float32)
    t2 = jax.nn.softmax(
        jax.random.normal(jax.random.PRNGKey(2), (N2, C2), dtype=jnp.float32),
        axis=-1)
    loss2 = jax.block_until_ready(
        soft_target_cross_entropy(x2, t2, tile_rows=8))
    ref2 = reference(x2, t2)
    assert jnp.allclose(loss2, ref2, rtol=1e-5, atol=1e-5), (loss2, ref2)

    # Test 3: bf16 inputs (halves HBM traffic); math is still f32 in-kernel.
    xb = x.astype(jnp.bfloat16)
    tb = target.astype(jnp.bfloat16)
    loss3 = jax.block_until_ready(soft_target_cross_entropy(xb, tb))
    ref3 = reference(xb, tb)
    assert jnp.allclose(loss3, ref3, rtol=1e-4, atol=1e-4), (loss3, ref3)

    print("KERNEL_OK")
</pallas_src>

<mosaic_0001>
module attributes {stable_mosaic.version = 11 : i64} {
  func.func @_soft_ce_kernel(%arg0: i32, %arg1: memref<8x128xf32, #tpu.memory_space<vmem>>, %arg2: memref<8x128xf32, #tpu.memory_space<vmem>>, %arg3: memref<1x1x128xf32, #tpu.memory_space<vmem>>) attributes {dimension_semantics = [#tpu.dimension_semantics<parallel>], iteration_bounds = array<i64: 2>, scalar_prefetch = 0 : i64, scratch_operands = 0 : i64, tpu.core_type = #tpu.core_type<tc>, window_params = [{transform_indices = @transform_0, window_bounds = array<i64: 8, 128>}, {transform_indices = @transform_1, window_bounds = array<i64: 8, 128>}, {transform_indices = @transform_2, window_bounds = array<i64: 1, 1, 128>}]} {
    %c0 = arith.constant 0 : index
    %c0_0 = arith.constant 0 : index
    %0 = vector.load %arg1[%c0, %c0_0] : memref<8x128xf32, #tpu.memory_space<vmem>>, vector<8x128xf32>
    %c0_1 = arith.constant 0 : index
    %c0_2 = arith.constant 0 : index
    %1 = vector.load %arg2[%c0_1, %c0_2] : memref<8x128xf32, #tpu.memory_space<vmem>>, vector<8x128xf32>
    %cst = arith.constant dense<0xFF800000> : vector<8xf32>
    %2 = vector.multi_reduction <maximumf>, %0, %cst [1] : vector<8x128xf32> to vector<8xf32>
    %3 = vector.shape_cast %2 : vector<8xf32> to vector<8x1xf32>
    %4 = vector.broadcast %3 : vector<8x1xf32> to vector<8x128xf32>
    %5 = arith.subf %0, %4 : vector<8x128xf32>
    %6 = math.exp %5 : vector<8x128xf32>
    %cst_3 = arith.constant dense<0.000000e+00> : vector<8xf32>
    %7 = vector.multi_reduction <add>, %6, %cst_3 [1] : vector<8x128xf32> to vector<8xf32>
    %8 = vector.shape_cast %7 : vector<8xf32> to vector<8x1xf32>
    %9 = math.log %8 : vector<8x1xf32>
    %10 = vector.broadcast %9 : vector<8x1xf32> to vector<8x128xf32>
    %11 = arith.subf %10, %5 : vector<8x128xf32>
    %12 = arith.mulf %1, %11 : vector<8x128xf32>
    %cst_4 = arith.constant dense<0.000000e+00> : vector<128xf32>
    %13 = vector.multi_reduction <add>, %12, %cst_4 [0] : vector<8x128xf32> to vector<128xf32>
    %14 = vector.shape_cast %13 : vector<128xf32> to vector<1x128xf32>
    %15 = vector.shape_cast %14 : vector<1x128xf32> to vector<1x1x128xf32>
    %c0_5 = arith.constant 0 : index
    %c0_6 = arith.constant 0 : index
    %c0_7 = arith.constant 0 : index
    %16 = vector.load %arg3[%c0_5, %c0_6, %c0_7] : memref<1x1x128xf32, #tpu.memory_space<vmem>>, vector<1x1x128xf32>
    tpu.vector_store %arg3[%c0_5, %c0_6, %c0_7], %15 {strides = array<i32>} : memref<1x1x128xf32, #tpu.memory_space<vmem>>, vector<1x1x128xf32>,
    return
  }
  func.func @transform_0(%arg0: i32) -> (i32, i32) {
    %c0_i32 = arith.constant 0 : i32
    %c0_i32_0 = arith.constant 0 : i32
    return %arg0, %c0_i32 : i32, i32
  }
  func.func @transform_1(%arg0: i32) -> (i32, i32) {
    %c0_i32 = arith.constant 0 : i32
    %c0_i32_0 = arith.constant 0 : i32
    return %arg0, %c0_i32 : i32, i32
  }
  func.func @transform_2(%arg0: i32) -> (i32, i32, i32) {
    %c0_i32 = arith.constant 0 : i32
    %c0_i32_0 = arith.constant 0 : i32
    %c0_i32_1 = arith.constant 0 : i32
    return %arg0, %c0_i32, %c0_i32_0 : i32, i32, i32
  }
}

</mosaic_0001>

<bundles_post_ra>
// kernel: tpu_custom_call.1
= control target key start
LH: loop header
LB: loop body
LE: loop exit
PB: predicated region body
PF: predicated region fallthrough
CT: control target
= control target key end

     0   :  { %7 = vsyncpa [#allocation3], 0  ;;  %s696_s0 = inlined_call_operand.hbm [shape: f32[16,128], index: 0, kind: input, shape index: {}]   ;;  %s697_s1 = inlined_call_operand.hbm [shape: f32[16,128], index: 1, kind: input, shape index: {}]   ;;  %s698_s2 = inlined_call_operand.hbm [shape: f32[2,1,128], index: 2, kind: output, shape index: {}]  }
   0x1   :  { %9 = vsyncpa [#allocation3 + $0x1], 0 }
   0x2   :  { %10 = vsyncpa [#allocation6], 0 }
   0x3   :  { %12 = vsyncpa [#allocation6 + $0x1], 0 }
   0x4   :  { %13 = vsyncpa [#allocation4], 0 }
   0x5   :  { %15 = vsyncpa [#allocation4 + $0x1], 0  ;;  %s535_s9 = smov 0   ;;  %s537_s10 = smov 0  }
   0x6   :  { %s539_s11 = smov 0   ;;  %s541_s12 = smov 0  }
   0x7 LB: > { %s556_s13 = sadd.s32 4294967295, %s518_s12   ;;  %s321_s14 = sadd.s32 4294967294, %s518_s12   ;;  %s518_s12 = sphi %s541_s12, %s709_s12   ;;  %s514_s11 = sphi %s539_s11, %s708_s11   ;;  %s510_s10 = sphi %s537_s10, %s707_s10   ;;  %s506_s9 = sphi %s535_s9, %s706_s9  }
   0x8   : > { %s560_s15 = sadd.s32 1, %s518_s12   ;;  %s28_s16 = sadd.s32 1, %s514_s11 }
   0x9   : > { %s25_s17 = ssub.s32 %s518_s12, %s560_s15  ;;  %p35_p0 = scmp.ne.s32.totalorder %s514_s11, %s510_s10 }
   0xa   : > { %p26_p1 = scmp.eq.s32.totalorder %s25_s17, 0  ;;  %p36_p2 = scmp.eq.s32.totalorder %s518_s12, 0 }
   0xb   : > { %p41_p3 = scmp.ne.s32.totalorder %s510_s10, %s506_s9  ;;  %p42_p4 = scmp.eq.s32.totalorder %s556_s13, 0 }
   0xc   : > { %s572_s18 = scalar_select %p26_p1, %s514_s11, %s28_s16  }
   0xd   : > { %p574_p5 = por %p36_p2, %p35_p0  ;;  %p578_p6 = por %p42_p4, %p41_p3 }
   0xe   : > { %p91_p7 = scmp.eq.s32.totalorder %s556_s13, 1  ;;  %p97_p8 = scmp.eq.s32.totalorder %s321_s14, 1 }
   0xf   : > { %p350_p10 = scmp.lt.s32.totalorder %s518_s12, 2  ;;  %s594_s23 = sand.u32 1, %s514_s11  }
  0x10   : > { %p585_p11 = por %p91_p7, %p35_p0  ;;  %p589_p12 = por %p97_p8, %p41_p3 }
  0x11   : > { %s325_s24 = sshll.u32 %s518_s12, 3  ;;  %s324_s25 = sshll.u32 %s594_s23, 3 }
  0x12   : > { %s125_s28 = scalar_lea.hbm %s696_s0, %s325_s24  ;;  %s121_s30 = scalar_lea.vmem [#allocation2], %s324_s25 }
  0x13   : > { %s127_s29 = sshll.u32 %s125_s28, 4  ;;  %s129_s3 = sshll.u32 %s121_s30, 4  ;;  %s128_s29 = int_to_ptr.hbm [resolvable:$true] %s127_s29  ;;  %s130_s3 = int_to_ptr.vmem [resolvable:$true] %s129_s3 }
  0x14   : > { %p603_p13 = pnand %p350_p10, %p574_p5  ;;  %p328_p0 = scmp.ge.s32.totalorder %s518_s12, 1 }
  0x15   : > { %p153_p1 = scmp.lt.s32.totalorder %s518_s12, 3  ;;  %s118_s5 = scalar_lea.sflag [#allocation3], %s594_s23 }
  0x16   : > { %s388_s6 = sshra.s32 %s128_s29, 4  ;;  %p392_p3 = pneg %p603_p13  ;;  %s389_s6 = int_to_ptr.hbm [resolvable:$true] %s388_s6 }
  0x17   : > { %s390_s7 = scalar_lea.hbm %s389_s6, 8  ;;  %s395_s16 = scalar_lea.hbm %s696_s0, 16 }
  0x18   : > { %p391_p2 = scmp.ne.s32.totalorder %s389_s6, %s390_s7  ;;  %p396_p5 = scmp.lt.s32.totalorder %s389_s6, %s696_s0 }
  0x19   : > { %p397_p8 = scmp.lt.s32.totalorder %s395_s16, %s390_s7 }
  0x1a   : > { %p393_p4 = pnand %p392_p3, %p391_p2 }
  0x1b   : > { %p398_p10 = por %p397_p8, %p396_p5 }
  0x1c   : > { %p394_p7 = pneg %p393_p4 }
  0x1e   : > { %p399_p9 = pnand %p398_p10, %p394_p7 }
  0x20   : > { %402 = shalt.err (!%p399_p9)
}
  0x21   : > { %342 = dma.hbm_to_vmem [thread:$0]  (!%p603_p13), %s128_s29, 128, %s130_s3, %s118_s5  }
  0x22   : > { %p627_p2 = pnand %p328_p0, %p153_p1  ;;  %s144_s30 = scalar_lea.hbm %s697_s1, %s325_s24 }
  0x23   : > { %s146_s6 = sshll.u32 %s144_s30, 4  ;;  %s140_s7 = scalar_lea.vmem [#allocation5], %s324_s25  ;;  %s147_s6 = int_to_ptr.hbm [resolvable:$true] %s146_s6 }
  0x24   : > { %s148_s8 = sshll.u32 %s140_s7, 4  ;;  %s137_s14 = scalar_lea.sflag [#allocation6], %s594_s23  ;;  %s149_s8 = int_to_ptr.vmem [resolvable:$true] %s148_s8 }
  0x25   : > { %s418_s16 = sshra.s32 %s147_s6, 4  ;;  %s425_s5 = scalar_lea.hbm %s697_s1, 16  ;;  %s419_s16 = int_to_ptr.hbm [resolvable:$true] %s418_s16 }
  0x26   : > { %s420_s17 = scalar_lea.hbm %s419_s16, 8  ;;  %p426_p4 = scmp.lt.s32.totalorder %s419_s16, %s697_s1 }
  0x27   : > { %p421_p9 = scmp.ne.s32.totalorder %s419_s16, %s420_s17  ;;  %p427_p7 = scmp.lt.s32.totalorder %s425_s5, %s420_s17 }
  0x29   : > { %p423_p0 = pnand %p421_p9, %p392_p3  ;;  %p428_p5 = por %p427_p7, %p426_p4 }
  0x2b   : > { %p424_p1 = pneg %p423_p0 }
  0x2d   : > { %p429_p8 = pnand %p428_p5, %p424_p1 }
  0x2f   : > { %432 = shalt.err (!%p429_p8)
}
  0x30   : > { %345 = dma.hbm_to_vmem [thread:$0]  (!%p603_p13), %s147_s6, 128, %s149_s8, %s137_s14  }
  0x31   : > { %157 = sbr.rel (%p627_p2) target bundleno = 329 (0x149), region = 28  ;;  %s649_s23 = sand.u32 (!%p627_p2), 1, %s510_s10  }
  0x32   : > { %s329_s25 = sshll.u32 (!%p627_p2), %s649_s23, 3  ;;  %s160_s27 = scalar_lea.sflag (!%p627_p2), [#allocation3], %s649_s23 }
  0x33   : > { %s163_s28 = scalar_lea.vmem (!%p627_p2), [#allocation2], %s329_s25 }
  0x36   : > { %493 = dma.done.wait (%p578_p6), %s160_s27, 128  }
  0x37   : > { %495 = vsyncadd (%p578_p6), %s160_s27, 4294967168  ;;  %s170_s4 = scalar_lea.sflag [#allocation6], %s649_s23  ;;  %s173_s30 = scalar_lea.vmem [#allocation5], %s329_s25 }
  0x38   : > { %497 = dma.done.wait (%p578_p6), %s170_s4, 128  }
  0x39   : > { %499 = vsyncadd (%p578_p6), %s170_s4, 4294967168  ;;  %v199_v0 = vld [vmem:[%s163_s28] sm:$0xff]  ;;  %v200_v8 = vld [vmem:[%s173_s30] sm:$0xff]  ;;  %s228_s6 = scalar_lea.hbm %s698_s2, %s556_s13  ;;  %s198_s7 = scalar_lea.vmem [#allocation7], %s649_s23 }
  0x3a   : > { %201 = vmax.xlane.f32.xlu0 %v199_v0  ;;  %s230_s8 = sshll.u32 %s198_s7, 4  ;;  %s232_s14 = sshll.u32 %s228_s6, 4  ;;  %s231_s8 = int_to_ptr.vmem [resolvable:$true] %s230_s8  ;;  %s233_s14 = int_to_ptr.hbm [resolvable:$true] %s232_s14 }
  0x3b   : > { %s220_s16 = scalar_lea.sflag [#allocation4], %s649_s23  ;;  %s462_s17 = sshra.s32 %s233_s14, 4  ;;  %s463_s17 = int_to_ptr.hbm [resolvable:$true] %s462_s17 }
  0x3c   : > { %s464_s29 = scalar_lea.hbm %s463_s17, 1  ;;  %s468_s13 = scalar_lea.hbm %s698_s2, 2 }
  0x3d   : > { %p465_p6 = scmp.ne.s32.totalorder %s463_s17, %s464_s29  ;;  %p469_p10 = scmp.lt.s32.totalorder %s463_s17, %s698_s2 }
  0x3e   : > { %p470_p2 = scmp.lt.s32.totalorder %s468_s13, %s464_s29 }
  0x3f   : > { %p466_p13 = pnand %p465_p6, %p585_p11 }
  0x40   : > { %p471_p9 = por %p470_p2, %p469_p10 }
  0x41   : > { %p467_p3 = pneg %p466_p13 }
  0x43   : > { %p472_p0 = pnand %p471_p9, %p467_p3 }
  0xad   : > { %v202_v1 = vpop.xlane.xlu0 %201 }
  0xae   : > { %v203_v2 = vsub.f32 %v199_v0, %v202_v1 }
  0xb0   : > { %v204_v3 = vmul.f32 1.442695, %v203_v2 }
  0xb2   : > { %384 = vpow2.f32 %v204_v3 }
  0xb8   : > { %v385_v4 = vpop.eup %384 }
  0xb9   : > { %206 = vadd.xlane.f32.xlu0 %v385_v4 }
 0x12c   : > { %v207_v5 = vpop.xlane.xlu0 %206 }
 0x12d   : > { %386 = vlog2.f32 %v207_v5 }
 0x133   : > { %v387_v6 = vpop.eup %386 }
 0x134   : > { %v209_v7 = vmul.f32 0.6931472, %v387_v6 }
 0x136   : > { %v210_v9 = vsub.f32 %v209_v7, %v203_v2 }
 0x138   : > { %v211_v10 = vmul.f32 %v210_v9, %v200_v8 }
 0x13a   : > { %v212_v11 = vrot.slane %v211_v10, 4 }
 0x13c   : > { %v213_v12 = vadd.f32 %v212_v11, %v211_v10 }
 0x13e   : > { %v214_v13 = vrot.slane %v213_v12, 2 }
 0x140   : > { %v215_v14 = vadd.f32 %v214_v13, %v213_v12 }
 0x142   : > { %v216_v15 = vrot.slane %v215_v14, 1 }
 0x144   : > { %v217_v16 = vadd.f32 %v216_v15, %v215_v14 }
 0x146   : > { %218 = vst [vmem:[%s198_s7] sm:$0x1] %v217_v16 }
 0x147   : > { %475 = shalt.err (!%p472_p0)
}
 0x148   : > { %337 = dma.vmem_to_hbm [thread:$0]  (%p585_p11), %s231_s8, 16, %s233_s14, %s220_s16  }
 0x149 PF: > { %s244_s23 = sand.u32 1, %s506_s9   ;;  %p705_p1 = scmp.ge.s32.totalorder %s518_s12, 2 }
 0x14a   : > { %s245_s25 = scalar_lea.sflag [#allocation4], %s244_s23 }
 0x14b   : > { %p347_p4 = pnand %p705_p1, %p589_p12 }
 0x14d   : > { %p348_p7 = pneg %p347_p4 }
 0x14f   : > { %501 = dma.done.wait (%p348_p7), %s245_s25, 16  }
 0x150   : > { %503 = vsyncadd (%p348_p7), %s245_s25, 4294967280  ;;  %p18_p5 = scmp.ge.s32.totalorder %s560_s15, 4   ;;  %s706_s9 = smov %s510_s10 }
 0x151   : > { %s707_s10 = smov %s514_s11  ;;  %s708_s11 = smov %s572_s18 }
 0x152   : > { %s709_s12 = smov %s560_s15  ;;  %20 = sbr.rel (!%p18_p5) target bundleno = 7 (0x7), region = 86 }
 0x157   :  { %250 = vsyncpa [#allocation3], 1 }
 0x158   :  { %252 = vsyncpa [#allocation3 + $0x1], 1 }
 0x159   :  { %253 = vsyncpa [#allocation6], 1 }
 0x15a   :  { %255 = vsyncpa [#allocation6 + $0x1], 1 }
 0x15b   :  { %256 = vsyncpa [#allocation4], 1 }
 0x15c   :  { %258 = vsyncpa [#allocation4 + $0x1], 1 }

</bundles_post_ra>
